<compile_context>
chip_gen: v7x
topology: tpu7x:2x2x1
jax: 0.10.0
libtpu: 0.0.40
codegen_flags: <defaults>
</compile_context>

<pallas_src>
import jax
import jax.numpy as jnp
from jax.experimental import pallas as pl
from jax.experimental.pallas import tpu as pltpu

_LANES = 128
_SUBLANES = 8
_MAX_BLOCK_ROWS = 2048   # (2048,128) f32 = 1 MiB; 3 inputs x 2 buffers = 6 MiB VMEM


def _l2_partials_kernel(o_ref, t_ref, m_ref, d_out_ref, n_out_ref):
    m = m_ref[...]
    md = m * (o_ref[...] - t_ref[...])
    groups = md.shape[0] // _SUBLANES
    # Fold sublane groups: (block_rows, 128) -> (groups, 8, 128), sum over the
    # group axis.  This is pure vreg adds on the VPU (free filler under the
    # HBM-bound roofline); the final cross-lane reduce of the (8, 128)
    # partials is deferred to the wrapper.
    d_out_ref[0] = md.reshape(groups, _SUBLANES, _LANES).sum(axis=0)
    n_out_ref[0] = m.reshape(groups, _SUBLANES, _LANES).sum(axis=0)


def _round_up(x, m):
    return (x + m - 1) // m * m


def _pick_block_rows(rows, max_block_rows):
    """rows is a multiple of 8; pick a large block that divides rows if possible."""
    if rows <= max_block_rows:
        return rows
    # Largest divisor of `rows` that is a multiple of 8 and big enough that
    # per-grid-step overhead (~0.35 us) stays well amortized.
    for cand in range(max_block_rows, 255, -_SUBLANES):
        if rows % cand == 0:
            return cand
    # Awkward factorization: fall back to a fixed large block; caller pads
    # rows up (one extra HBM copy via jnp.pad, correctness preserved because
    # the mask padding is zero).
    return min(1024, max_block_rows)


def _to_slab(x, rows):
    """Flatten to 1D f32, zero-pad only if needed, reshape to (rows, 128)."""
    flat = jnp.ravel(x).astype(jnp.float32)
    padded = rows * _LANES
    if padded != flat.shape[0]:
        # Zero mask padding contributes nothing to either sum.
        flat = jnp.pad(flat, (0, padded - flat.shape[0]))
    return flat.reshape(rows, _LANES)


def l2_loss2(outputs, targets, mask, *, max_block_rows=_MAX_BLOCK_ROWS):
    """Pallas implementation of the l2_loss2 forward pass. Returns an f32 scalar."""
    n_elem = int(outputs.size)
    rows_min = _round_up((n_elem + _LANES - 1) // _LANES, _SUBLANES)
    block_rows = _pick_block_rows(rows_min, max_block_rows)
    rows = _round_up(rows_min, block_rows)
    num_blocks = rows // block_rows

    o2 = _to_slab(outputs, rows)
    t2 = _to_slab(targets, rows)
    m2 = _to_slab(mask, rows)

    in_spec = pl.BlockSpec((block_rows, _LANES), lambda i: (i, 0))
    out_spec = pl.BlockSpec((1, _SUBLANES, _LANES), lambda i: (i, 0, 0))
    part_shape = jax.ShapeDtypeStruct((num_blocks, _SUBLANES, _LANES), jnp.float32)

    n_padded = rows * _LANES
    cost = pl.CostEstimate(
        flops=4 * n_padded,
        transcendentals=0,
        bytes_accessed=3 * n_padded * 4 + 2 * num_blocks * _SUBLANES * _LANES * 4,
    )

    d_part, n_part = pl.pallas_call(
        _l2_partials_kernel,
        out_shape=(part_shape, part_shape),
        grid_spec=pltpu.PrefetchScalarGridSpec(
            num_scalar_prefetch=0,
            grid=(num_blocks,),
            in_specs=[in_spec, in_spec, in_spec],
            out_specs=[out_spec, out_spec],
        ),
        compiler_params=pltpu.CompilerParams(
            dimension_semantics=("parallel",),
        ),
        cost_estimate=cost,
    )(o2, t2, m2)

    # Tiny (num_blocks, 8, 128) combine + the scalar arithmetic stay in XLA.
    s = jnp.sum(d_part)
    n = jnp.sum(n_part)
    # masked_diff_sum^2 / masked_sum / n   (both denominators are mask.sum()).
    # NOTE: if mask is all zeros this yields inf/nan, matching the PyTorch reference.
    return s * s / n / n


def _reference(outputs, targets, mask):
    n = mask.sum()
    diff = outputs - targets
    masked_diff = mask * diff
    s = masked_diff.sum()
    return (s ** 2) / mask.sum() / n


if __name__ == "__main__":
    key = jax.random.PRNGKey(0)
    k1, k2, k3 = jax.random.split(key, 3)

    # Small NCHW-shaped inputs consistent with an autoencoder reconstruction loss.
    shape = (2, 4, 16, 16)
    outputs = jax.random.normal(k1, shape, dtype=jnp.float32)
    targets = jax.random.normal(k2, shape, dtype=jnp.float32)
    mask = (jax.random.uniform(k3, shape) > 0.5).astype(jnp.float32)

    result = jax.block_until_ready(l2_loss2(outputs, targets, mask))
    ref = _reference(outputs, targets, mask)
    assert jnp.allclose(result, ref, rtol=1e-4, atol=1e-6), (result, ref)

    # Second case with a non-128-multiple element count (exercises the pad path).
    shape2 = (2, 3, 17, 16)
    o2 = jax.random.normal(k1, shape2, dtype=jnp.float32)
    t2 = jax.random.normal(k2, shape2, dtype=jnp.float32)
    m2 = (jax.random.uniform(k3, shape2) > 0.5).astype(jnp.float32)

    result2 = jax.block_until_ready(l2_loss2(o2, t2, m2))
    ref2 = _reference(o2, t2, m2)
    assert jnp.allclose(result2, ref2, rtol=1e-4, atol=1e-6), (result2, ref2)

    # Third case: force a small block so the multi-block "parallel" grid and
    # the cross-block wrapper combine are exercised with small data.
    result3 = jax.block_until_ready(l2_loss2(outputs, targets, mask, max_block_rows=8))
    assert jnp.allclose(result3, ref, rtol=1e-4, atol=1e-6), (result3, ref)

    print("KERNEL_OK")
</pallas_src>

<mosaic_0001>
module attributes {stable_mosaic.version = 11 : i64} {
  func.func @_l2_partials_kernel(%arg0: i32, %arg1: memref<16x128xf32, #tpu.memory_space<vmem>>, %arg2: memref<16x128xf32, #tpu.memory_space<vmem>>, %arg3: memref<16x128xf32, #tpu.memory_space<vmem>>, %arg4: memref<1x8x128xf32, #tpu.memory_space<vmem>>, %arg5: memref<1x8x128xf32, #tpu.memory_space<vmem>>) attributes {dimension_semantics = [#tpu.dimension_semantics<parallel>], iteration_bounds = array<i64: 1>, scalar_prefetch = 0 : i64, scratch_operands = 0 : i64, tpu.core_type = #tpu.core_type<tc>, window_params = [{transform_indices = @transform_0, window_bounds = array<i64: 16, 128>}, {transform_indices = @transform_1, window_bounds = array<i64: 16, 128>}, {transform_indices = @transform_2, window_bounds = array<i64: 16, 128>}, {transform_indices = @transform_3, window_bounds = array<i64: 1, 8, 128>}, {transform_indices = @transform_4, window_bounds = array<i64: 1, 8, 128>}]} {
    %c0 = arith.constant 0 : index
    %c0_0 = arith.constant 0 : index
    %0 = vector.load %arg3[%c0, %c0_0] : memref<16x128xf32, #tpu.memory_space<vmem>>, vector<16x128xf32>
    %c0_1 = arith.constant 0 : index
    %c0_2 = arith.constant 0 : index
    %1 = vector.load %arg1[%c0_1, %c0_2] : memref<16x128xf32, #tpu.memory_space<vmem>>, vector<16x128xf32>
    %c0_3 = arith.constant 0 : index
    %c0_4 = arith.constant 0 : index
    %2 = vector.load %arg2[%c0_3, %c0_4] : memref<16x128xf32, #tpu.memory_space<vmem>>, vector<16x128xf32>
    %3 = arith.subf %1, %2 : vector<16x128xf32>
    %4 = arith.mulf %0, %3 : vector<16x128xf32>
    %5 = vector.shape_cast %4 : vector<16x128xf32> to vector<2x8x128xf32>
    %cst = arith.constant dense<0.000000e+00> : vector<8x128xf32>
    %6 = vector.multi_reduction <add>, %5, %cst [0] : vector<2x8x128xf32> to vector<8x128xf32>
    %c0_5 = arith.constant 0 : index
    %c0_6 = arith.constant 0 : index
    %c0_7 = arith.constant 0 : index
    %7 = vector.load %arg4[%c0_5, %c0_6, %c0_7] : memref<1x8x128xf32, #tpu.memory_space<vmem>>, vector<1x8x128xf32>
    %8 = vector.shape_cast %7 : vector<1x8x128xf32> to vector<8x128xf32>
    %9 = vector.shape_cast %6 : vector<8x128xf32> to vector<1x8x128xf32>
    tpu.vector_store %arg4[%c0_5, %c0_6, %c0_7], %9 {strides = array<i32>} : memref<1x8x128xf32, #tpu.memory_space<vmem>>, vector<1x8x128xf32>,
    %10 = vector.shape_cast %0 : vector<16x128xf32> to vector<2x8x128xf32>
    %cst_8 = arith.constant dense<0.000000e+00> : vector<8x128xf32>
    %11 = vector.multi_reduction <add>, %10, %cst_8 [0] : vector<2x8x128xf32> to vector<8x128xf32>
    %c0_9 = arith.constant 0 : index
    %c0_10 = arith.constant 0 : index
    %c0_11 = arith.constant 0 : index
    %12 = vector.load %arg5[%c0_9, %c0_10, %c0_11] : memref<1x8x128xf32, #tpu.memory_space<vmem>>, vector<1x8x128xf32>
    %13 = vector.shape_cast %12 : vector<1x8x128xf32> to vector<8x128xf32>
    %14 = vector.shape_cast %11 : vector<8x128xf32> to vector<1x8x128xf32>
    tpu.vector_store %arg5[%c0_9, %c0_10, %c0_11], %14 {strides = array<i32>} : memref<1x8x128xf32, #tpu.memory_space<vmem>>, vector<1x8x128xf32>,
    return
  }
  func.func @transform_0(%arg0: i32) -> (i32, i32) {
    %c0_i32 = arith.constant 0 : i32
    %c0_i32_0 = arith.constant 0 : i32
    return %arg0, %c0_i32 : i32, i32
  }
  func.func @transform_1(%arg0: i32) -> (i32, i32) {
    %c0_i32 = arith.constant 0 : i32
    %c0_i32_0 = arith.constant 0 : i32
    return %arg0, %c0_i32 : i32, i32
  }
  func.func @transform_2(%arg0: i32) -> (i32, i32) {
    %c0_i32 = arith.constant 0 : i32
    %c0_i32_0 = arith.constant 0 : i32
    return %arg0, %c0_i32 : i32, i32
  }
  func.func @transform_3(%arg0: i32) -> (i32, i32, i32) {
    %c0_i32 = arith.constant 0 : i32
    %c0_i32_0 = arith.constant 0 : i32
    %c0_i32_1 = arith.constant 0 : i32
    return %arg0, %c0_i32, %c0_i32_0 : i32, i32, i32
  }
  func.func @transform_4(%arg0: i32) -> (i32, i32, i32) {
    %c0_i32 = arith.constant 0 : i32
    %c0_i32_0 = arith.constant 0 : i32
    %c0_i32_1 = arith.constant 0 : i32
    return %arg0, %c0_i32, %c0_i32_0 : i32, i32, i32
  }
}

</mosaic_0001>

<bundles_post_ra>
// kernel: tpu_custom_call.1
= control target key start
LH: loop header
LB: loop body
LE: loop exit
PB: predicated region body
PF: predicated region fallthrough
CT: control target
= control target key end

     0   :  { %10 = vsyncpa [#allocation3], 0  ;;  %s336_s0 = inlined_call_operand.hbm [shape: f32[16,128], index: 0, kind: input, shape index: {}]   ;;  %s337_s1 = inlined_call_operand.hbm [shape: f32[16,128], index: 1, kind: input, shape index: {}]   ;;  %s338_s2 = inlined_call_operand.hbm [shape: f32[16,128], index: 2, kind: input, shape index: {}]   ;;  %s339_s3 = inlined_call_operand.hbm [shape: f32[1,8,128], index: 3, kind: output, shape index: {0}]   ;;  %s340_s4 = inlined_call_operand.hbm [shape: f32[1,8,128], index: 4, kind: output, shape index: {1}]  }
   0x1   :  { %11 = vsyncpa [#allocation6], 0 }
   0x2   :  { %12 = vsyncpa [#allocation4], 0 }
   0x3   :  { %13 = vsyncpa [#allocation10], 0  ;;  %s228_s15 = smov [#allocation5]   ;;  %s229_s17 = smov [#allocation2]  }
   0x4   :  { %s31_s16 = sshll.u32 %s228_s15, 4  ;;  %s19_s18 = sshll.u32 %s229_s17, 4  ;;  %s32_s16 = int_to_ptr.vmem [resolvable:$true] %s31_s16  ;;  %s260_s18 = int_to_ptr.vmem [resolvable:$true] %s19_s18 }
   0x5   :  { %s110_s21 = scalar_lea.hbm %s337_s1, 256 }
   0x6   :  { %p111_p0 = scmp.ne.s32.totalorder %s337_s1, %s110_s21  ;;  %p114_p1 = scmp.lt.u32.totalorder %s110_s21, %s337_s1 }
   0x8   :  { %p116_p2 = pnand %p114_p1, %p111_p0 }
   0xa   :  { %119 = shalt.err (!%p116_p2)
}
   0xb   :  { %s120_s26 = scalar_lea.vmem %s32_s16, 256  ;;  %p125_p4 = scmp.lt.s32.totalorder %s32_s16, %s32_s16 }
   0xc   :  { %p121_p3 = scmp.ne.s32.totalorder %s32_s16, %s120_s26  ;;  %p126_p5 = scmp.lt.s32.totalorder %s120_s26, %s120_s26 }
   0xe   :  { %p127_p6 = por %p126_p5, %p125_p4 }
  0x10   :  { %p128_p7 = pnand %p127_p6, %p121_p3 }
  0x12   :  { %131 = shalt.err (!%p128_p7)
}
  0x13   :  { %s230_s27 = smov 128   ;;  %s231_s28 = smov 8  }
  0x14   :  { %37 = dma.hbm_to_vmem [thread:$0]  %s337_s1, 256, %s32_s16, [#allocation6], %s230_s27, %s230_s27, %s231_s28  }
  0x15   :  { %s132_s7 = scalar_lea.hbm %s336_s0, 256 }
  0x16   :  { %p133_p8 = scmp.ne.s32.totalorder %s336_s0, %s132_s7  ;;  %p136_p9 = scmp.lt.u32.totalorder %s132_s7, %s336_s0 }
  0x18   :  { %p138_p10 = pnand %p136_p9, %p133_p8 }
  0x1a   :  { %141 = shalt.err (!%p138_p10)
}
  0x1b   :  { %s142_s12 = scalar_lea.vmem %s260_s18, 256  ;;  %p147_p12 = scmp.lt.s32.totalorder %s260_s18, %s260_s18 }
  0x1c   :  { %p143_p11 = scmp.ne.s32.totalorder %s260_s18, %s142_s12  ;;  %p148_p13 = scmp.lt.s32.totalorder %s142_s12, %s142_s12 }
  0x1e   :  { %p149_p0 = por %p148_p13, %p147_p12 }
  0x20   :  { %p150_p1 = pnand %p149_p0, %p143_p11 }
  0x22   :  { %153 = shalt.err (!%p150_p1)
}
  0x23   :  { %25 = dma.hbm_to_vmem [thread:$0]  %s336_s0, 256, %s260_s18, [#allocation3], %s230_s27, %s230_s27, %s231_s28  }
  0x24   :  { %s232_s14 = smov [#allocation7]   ;;  %s154_s19 = scalar_lea.hbm %s338_s2, 256 }
  0x25   :  { %s43_s15 = sshll.u32 %s232_s14, 4  ;;  %p155_p2 = scmp.ne.s32.totalorder %s338_s2, %s154_s19  ;;  %s44_s15 = int_to_ptr.vmem [resolvable:$true] %s43_s15 }
  0x26   :  { %p158_p3 = scmp.lt.u32.totalorder %s154_s19, %s338_s2 }
  0x28   :  { %p160_p4 = pnand %p158_p3, %p155_p2 }
  0x2a   :  { %163 = shalt.err (!%p160_p4)
}
  0x2b   :  { %s164_s24 = scalar_lea.vmem %s44_s15, 256  ;;  %p169_p6 = scmp.lt.s32.totalorder %s44_s15, %s44_s15 }
  0x2c   :  { %p165_p5 = scmp.ne.s32.totalorder %s44_s15, %s164_s24  ;;  %p170_p7 = scmp.lt.s32.totalorder %s164_s24, %s164_s24 }
  0x2e   :  { %p171_p8 = por %p170_p7, %p169_p6 }
  0x30   :  { %p172_p9 = pnand %p171_p8, %p165_p5 }
  0x32   :  { %175 = shalt.err (!%p172_p9)
}
  0x33   :  { %49 = dma.hbm_to_vmem [thread:$0]  %s338_s2, 256, %s44_s15, [#allocation6], %s230_s27, %s230_s27, %s231_s28  }
  0x34   :  { %220 = dma.done.wait [#allocation3], 256  }
  0x35   :  { %221 = vsyncadd [#allocation3], 4294967040 }
  0x36   :  { %222 = dma.done.wait [#allocation6], 512  }
  0x37   :  { %223 = vsyncadd [#allocation6], 4294966784  ;;  %s233_s25 = smov [#allocation9]   ;;  %v59_v0 = vld [vmem:[#allocation7] sm:$0xff]  ;;  %v60_v1 = vld [vmem:[#allocation7 + $0x8] sm:$0xff]  ;;  %s234_s29 = smov [#allocation8]  }
  0x38   :  { %s89_s26 = sshll.u32 %s233_s25, 4  ;;  %v61_v2 = vld [vmem:[#allocation2] sm:$0xff]  ;;  %v62_v3 = vld [vmem:[#allocation2 + $0x8] sm:$0xff]  ;;  %v63_v4 = vld [vmem:[#allocation5] sm:$0xff]  ;;  %v71_v6 = vadd.f32 %v60_v1, %v59_v0  ;;  %s79_s30 = sshll.u32 %s234_s29, 4  ;;  %s90_s26 = int_to_ptr.vmem [resolvable:$true] %s89_s26  ;;  %s80_s30 = int_to_ptr.vmem [resolvable:$true] %s79_s30 }
  0x39   :  { %v64_v5 = vld [vmem:[#allocation5 + $0x8] sm:$0xff]  ;;  %v65_v7 = vsub.f32 %v61_v2, %v63_v4  ;;  %s176_s2 = scalar_lea.vmem %s90_s26, 128  ;;  %p181_p11 = scmp.lt.s32.totalorder %s90_s26, %s90_s26 }
  0x3a   :  { %v66_v8 = vsub.f32 %v62_v3, %v64_v5  ;;  %72 = vst [vmem:[#allocation9] sm:$0xff] %v71_v6  ;;  %p177_p10 = scmp.ne.s32.totalorder %s90_s26, %s176_s2  ;;  %p182_p12 = scmp.lt.s32.totalorder %s176_s2, %s176_s2 }
  0x3b   :  { %v67_v9 = vmul.f32 %v65_v7, %v59_v0 }
  0x3c   :  { %v68_v10 = vmul.f32 %v66_v8, %v60_v1  ;;  %p183_p13 = por %p182_p12, %p181_p11 }
  0x3e   :  { %p184_p0 = pnand %p183_p13, %p177_p10 }
  0x40   :  { %187 = shalt.err (!%p184_p0)
}
  0x41   :  { %s188_s5 = scalar_lea.hbm %s340_s4, 128 }
  0x42   :  { %p189_p1 = scmp.ne.s32.totalorder %s340_s4, %s188_s5  ;;  %p192_p2 = scmp.lt.u32.totalorder %s188_s5, %s340_s4 }
  0x44   :  { %p194_p3 = pnand %p192_p2, %p189_p1 }
  0x46   :  { %197 = shalt.err (!%p194_p3)
}
  0x47   :  { %92 = dma.vmem_to_hbm [thread:$0]  %s90_s26, 128, %s340_s4, [#allocation10]   ;;  %v69_v11 = vadd.f32 %v68_v10, %v67_v9 }
  0x48   :  { %s198_s12 = scalar_lea.vmem %s80_s30, 128  ;;  %p203_p5 = scmp.lt.s32.totalorder %s80_s30, %s80_s30 }
  0x49   :  { %70 = vst [vmem:[#allocation8] sm:$0xff] %v69_v11  ;;  %p199_p4 = scmp.ne.s32.totalorder %s80_s30, %s198_s12  ;;  %p204_p6 = scmp.lt.s32.totalorder %s198_s12, %s198_s12 }
  0x4b   :  { %p205_p7 = por %p204_p6, %p203_p5 }
  0x4d   :  { %p206_p8 = pnand %p205_p7, %p199_p4 }
  0x4f   :  { %209 = shalt.err (!%p206_p8)
}
  0x50   :  { %s210_s14 = scalar_lea.hbm %s339_s3, 128 }
  0x51   :  { %p211_p9 = scmp.ne.s32.totalorder %s339_s3, %s210_s14  ;;  %p214_p10 = scmp.lt.u32.totalorder %s210_s14, %s339_s3 }
  0x53   :  { %p216_p11 = pnand %p214_p10, %p211_p9 }
  0x55   :  { %219 = shalt.err (!%p216_p11)
}
  0x56   :  { %82 = dma.vmem_to_hbm [thread:$0]  %s80_s30, 128, %s339_s3, [#allocation4]  }
  0x57   :  { %224 = dma.done.wait [#allocation4], 128  }
  0x58   :  { %225 = vsyncadd [#allocation4], 4294967168 }
  0x59   :  { %226 = dma.done.wait [#allocation10], 128  }
  0x5a   :  { %227 = vsyncadd [#allocation10], 4294967168 }
  0x5b   :  { %99 = vsyncpa [#allocation3], 1 }
  0x5c   :  { %100 = vsyncpa [#allocation6], 1 }
  0x5d   :  { %101 = vsyncpa [#allocation4], 1 }
  0x5e   :  { %102 = vsyncpa [#allocation10], 1 }

</bundles_post_ra>
